<compile_context>
chip_gen: v7x
topology: tpu7x:2x2x1
jax: 0.10.0
libtpu: 0.0.40
codegen_flags: <defaults>
</compile_context>

<pallas_src>
import functools

import jax
import jax.numpy as jnp
from jax import lax
from jax.experimental import pallas as pl
from jax.experimental.pallas import tpu as pltpu


def _shaped_attention_kernel(params_ref,   # SMEM (3,): alpha, beta, gamma (f32)
                             x_ref,        # VMEM (1, N, D)   bf16, resident over groups
                             wq_ref,       # VMEM (1, D, GW)  bf16 (scale pre-folded)
                             wk_ref,       # VMEM (1, D, GW)  bf16
                             wv_ref,       # VMEM (1, D, GW)  bf16
                             wo_ref,       # VMEM (1, GW, D)  bf16
                             b_ref,        # VMEM (1, D)      f32
                             o_ref,        # VMEM (1, N, D)   f32 (resident accumulator)
                             ctx_scr,      # VMEM scratch (TQ, GW) f32
                             *, seq_len, head_dim, group_heads, q_chunk):
    f32 = jnp.float32
    bf16 = jnp.bfloat16
    g = pl.program_id(1)

    alpha = params_ref[0]
    beta = params_ref[1]
    gamma_over_n = params_ref[2] * (1.0 / seq_len)

    x = x_ref[0]          # (N, D) bf16
    wq = wq_ref[0]        # (D, GW)
    wk = wk_ref[0]
    wv = wv_ref[0]
    wo = wo_ref[0]        # (GW, D)
    bias = b_ref[...]     # (1, D) f32

    # Group-wide K / V projections: one wide bf16 MXU dot each, f32 accumulate.
    kg = jnp.dot(x, wk, preferred_element_type=f32).astype(bf16)   # (N, GW)
    vg = jnp.dot(x, wv, preferred_element_type=f32)                # (N, GW) f32
    vg_b = vg.astype(bf16)
    # Column-sum of V, hoisted out of the per-head / per-chunk loops.
    colsum_v = jnp.sum(vg, axis=0, keepdims=True)                  # (1, GW) f32

    n_chunks = seq_len // q_chunk
    for qc in range(n_chunks):          # static unroll -> every slice is static
        qs = qc * q_chunk

        # Q projection for this row chunk (scale already folded into wq).
        xq = x_ref[0, qs:qs + q_chunk, :]                          # (TQ, D) bf16
        qg = jnp.dot(xq, wq, preferred_element_type=f32)           # (TQ, GW) f32

        for h in range(group_heads):
            hs = h * head_dim
            qh = qg[:, hs:hs + head_dim].astype(bf16)              # (TQ, d)
            kh = kg[:, hs:hs + head_dim]                           # (N, d)
            # scores = qh @ kh^T via trans_b contraction (no materialized .T)
            scores = lax.dot_general(qh, kh, (((1,), (1,)), ((), ())),
                                     preferred_element_type=f32)   # (TQ, N) f32
            m = jnp.max(scores, axis=-1, keepdims=True)
            e = jnp.exp(scores - m)
            denom = jnp.sum(e, axis=-1, keepdims=True)
            # Unnormalized PV matmul; softmax normalizer + beta applied after
            # as an O(TQ*d) row scale instead of an O(TQ*N) pass on the scores.
            ctx = jnp.dot(e.astype(bf16), vg_b[:, hs:hs + head_dim],
                          preferred_element_type=f32)              # (TQ, d) f32
            row_scale = beta * pl.reciprocal(denom, approx=True)   # (TQ, 1) f32
            ctx_scr[:, hs:hs + head_dim] = ctx * row_scale

        # (alpha*I + beta*softmax - gamma/n) @ V, restricted to this row chunk:
        #     beta*(sm@V) + alpha*V[rows] - (gamma/n)*colsum(V)
        shaped = (ctx_scr[...]
                  + alpha * vg[qs:qs + q_chunk, :]
                  - gamma_over_n * colsum_v).astype(bf16)          # (TQ, GW)

        # This group's slice of the output projection: one wide MXU dot,
        # accumulated into the resident f32 output block across groups.
        contrib = jnp.dot(shaped, wo, preferred_element_type=f32)  # (TQ, D) f32

        @pl.when(g == 0)
        def _():
            o_ref[0, qs:qs + q_chunk, :] = contrib + bias

        @pl.when(g != 0)
        def _():
            o_ref[0, qs:qs + q_chunk, :] += contrib


def _pick_group_heads(heads, head_dim, max_width=256):
    """Largest divisor of `heads` whose grouped width heads*d stays <= max_width."""
    g = 1
    for cand in range(1, heads + 1):
        if heads % cand == 0 and cand * head_dim <= max_width:
            g = cand
    return g


def _pick_q_chunk(n, max_chunk=512):
    """Query-row chunk: full N if small, else the largest 8-aligned divisor <= max."""
    if n <= max_chunk:
        return n
    for t in range(max_chunk, 7, -1):
        if n % t == 0 and t % 8 == 0:
            return t
    return n


def _vmem_limit_bytes(n, dim, gw, tq):
    bf16, f32 = 2, 4
    blocks = (2 * n * dim * bf16            # x block (double-buffered)
              + 2 * 3 * dim * gw * bf16     # Wq/Wk/Wv group slabs
              + 2 * gw * dim * bf16         # Wout group slab
              + 2 * dim * f32               # bias
              + 2 * n * dim * f32           # resident f32 output accumulator block
              + tq * gw * f32)              # ctx staging scratch
    temps = (n * gw * (2 * f32 + 2 * bf16)  # kg/vg (+ bf16 copies)
             + 3 * tq * n * f32             # scores / exp temporaries
             + 6 * tq * max(gw, dim) * f32) # qg / shaped / contrib etc.
    need = int((blocks + temps) * 1.3) + (2 << 20)

    phys = 64 * (1 << 20)                   # conservative (v7x physical VMEM)
    try:
        phys = getattr(pltpu.get_tpu_info(), "vmem_capacity_bytes", phys)
    except Exception:
        pass
    return max(32 * (1 << 20), min(need, phys - (4 << 20)))


def shaped_attention(x, w_qkv, w_out, b_out, alpha, beta, gamma, *, heads,
                     max_group_width=256, max_q_chunk=512):
    b, n, dim = x.shape
    assert dim % heads == 0
    d = dim // heads
    scale = float(dim) ** (-0.5)    # module uses dim**-0.5, not head_dim**-0.5

    f32, bf16 = jnp.float32, jnp.bfloat16

    group_heads = _pick_group_heads(heads, d, max_group_width)
    n_groups = heads // group_heads
    gw = group_heads * d
    q_chunk = _pick_q_chunk(n, max_q_chunk)
    assert n % q_chunk == 0

    # Input-major weights, laid out once in the wrapper; everything the MXU
    # touches is handed over in bf16.
    wqkv_t = jnp.asarray(w_qkv, f32).T                     # (D, 3D)
    wq = wqkv_t[:, 0 * dim:1 * dim] * scale                # fold scale into Q
    wk = wqkv_t[:, 1 * dim:2 * dim]
    wv = wqkv_t[:, 2 * dim:3 * dim]
    # Group-major weight stacks: (n_groups, D, GW) and (n_groups, GW, D).
    wq_g = wq.reshape(dim, n_groups, gw).transpose(1, 0, 2).astype(bf16)
    wk_g = wk.reshape(dim, n_groups, gw).transpose(1, 0, 2).astype(bf16)
    wv_g = wv.reshape(dim, n_groups, gw).transpose(1, 0, 2).astype(bf16)
    wo_g = jnp.asarray(w_out, f32).T.reshape(n_groups, gw, dim).astype(bf16)
    bias = jnp.asarray(b_out, f32).reshape(1, dim)
    params = jnp.concatenate([alpha, beta, gamma]).astype(f32)   # (3,)

    kernel = functools.partial(_shaped_attention_kernel, seq_len=n, head_dim=d,
                               group_heads=group_heads, q_chunk=q_chunk)

    # TODO(synk): for b==1 on v7x, a q-tile grid axis marked "parallel" would give
    # the second TensorCore work; here megacore parallelism comes from the batch axis.
    return pl.pallas_call(
        kernel,
        out_shape=jax.ShapeDtypeStruct((b, n, dim), f32),
        grid=(b, n_groups),
        in_specs=[
            pl.BlockSpec(memory_space=pltpu.MemorySpace.SMEM),        # params (3,)
            pl.BlockSpec((1, n, dim), lambda i, g: (i, 0, 0)),        # x, resident over groups
            pl.BlockSpec((1, dim, gw), lambda i, g: (g, 0, 0)),       # Wq group slab
            pl.BlockSpec((1, dim, gw), lambda i, g: (g, 0, 0)),       # Wk group slab
            pl.BlockSpec((1, dim, gw), lambda i, g: (g, 0, 0)),       # Wv group slab
            pl.BlockSpec((1, gw, dim), lambda i, g: (g, 0, 0)),       # Wout group slab
            pl.BlockSpec((1, dim), lambda i, g: (0, 0)),              # bias, resident
        ],
        out_specs=pl.BlockSpec((1, n, dim), lambda i, g: (i, 0, 0)),  # accumulated over groups
        scratch_shapes=[pltpu.VMEM((q_chunk, gw), f32)],              # per-head ctx staging
        compiler_params=pltpu.CompilerParams(
            dimension_semantics=("parallel", "arbitrary"),
            vmem_limit_bytes=_vmem_limit_bytes(n, dim, gw, q_chunk)),
    )(params, x.astype(bf16), wq_g, wk_g, wv_g, wo_g, bias)


def shaped_attention_ref(x, w_qkv, w_out, b_out, alpha, beta, gamma, *, heads):
    """Pure-JAX f32 reference mirroring the PyTorch forward."""
    b, n, dim = x.shape
    scale = float(dim) ** (-0.5)
    qkv = x @ w_qkv.T
    q, k, v = jnp.split(qkv, 3, axis=-1)

    def heads_first(t):
        return t.reshape(b, n, heads, -1).transpose(0, 2, 1, 3)  # (b, h, n, d)

    q, k, v = map(heads_first, (q, k, v))
    dots = jnp.einsum("bhnd,bhmd->bhnm", q, k) * scale
    sm = jax.nn.softmax(dots, axis=-1)
    attn = alpha[0] * jnp.eye(n) + beta[0] * sm - gamma[0] * (1.0 / n)
    out = jnp.einsum("bhnm,bhmd->bhnd", attn, v)
    out = out.transpose(0, 2, 1, 3).reshape(b, n, dim)
    return out @ w_out.T + b_out


if __name__ == "__main__":
    B, N, DIM, HEADS = 2, 8, 32, 4

    key = jax.random.PRNGKey(0)
    k0, k1, k2, k3 = jax.random.split(key, 4)

    x = jax.random.normal(k0, (B, N, DIM), dtype=jnp.float32)
    w_qkv = 0.05 * jax.random.normal(k1, (3 * DIM, DIM), dtype=jnp.float32)
    w_out = 0.05 * jax.random.normal(k2, (DIM, DIM), dtype=jnp.float32)
    b_out = 0.01 * jax.random.normal(k3, (DIM,), dtype=jnp.float32)
    # module defaults are alpha=1, beta=0, gamma=0; nonzero beta/gamma chosen here
    # (deterministically) so the softmax and uniform-subtraction paths are exercised.
    alpha = jnp.ones((1,), jnp.float32)
    beta = jnp.full((1,), 0.5, jnp.float32)
    gamma = jnp.full((1,), 0.1, jnp.float32)

    out = shaped_attention(x, w_qkv, w_out, b_out, alpha, beta, gamma, heads=HEADS)
    out = jax.block_until_ready(out)

    ref = shaped_attention_ref(x, w_qkv, w_out, b_out, alpha, beta, gamma, heads=HEADS)
    assert out.shape == (B, N, DIM)
    # bf16 MXU operands -> bf16-appropriate tolerance vs the f32 reference.
    err = float(jnp.max(jnp.abs(out - ref)))
    assert err < 2e-2, f"mismatch vs reference: max abs err {err}"

    print("KERNEL_OK")
</pallas_src>

<mosaic_0001>
module attributes {stable_mosaic.version = 11 : i64} {
  func.func @_shaped_attention_kernel(%arg0: i32, %arg1: i32, %arg2: memref<3xf32, #tpu.memory_space<smem>>, %arg3: memref<1x8x32xbf16, #tpu.memory_space<vmem>>, %arg4: memref<1x32x32xbf16, #tpu.memory_space<vmem>>, %arg5: memref<1x32x32xbf16, #tpu.memory_space<vmem>>, %arg6: memref<1x32x32xbf16, #tpu.memory_space<vmem>>, %arg7: memref<1x32x32xbf16, #tpu.memory_space<vmem>>, %arg8: memref<1x32xf32, #tpu.memory_space<vmem>>, %arg9: memref<1x8x32xf32, #tpu.memory_space<vmem>>, %arg10: memref<8x32xf32, #tpu.memory_space<vmem>>) attributes {dimension_semantics = [#tpu.dimension_semantics<parallel>, #tpu.dimension_semantics<arbitrary>], iteration_bounds = array<i64: 2, 1>, scalar_prefetch = 0 : i64, scratch_operands = 1 : i64, tpu.core_type = #tpu.core_type<tc>, window_params = [{transform_indices = @transform_0, window_bounds = array<i64: 3>}, {transform_indices = @transform_1, window_bounds = array<i64: 1, 8, 32>}, {transform_indices = @transform_2, window_bounds = array<i64: 1, 32, 32>}, {transform_indices = @transform_3, window_bounds = array<i64: 1, 32, 32>}, {transform_indices = @transform_4, window_bounds = array<i64: 1, 32, 32>}, {transform_indices = @transform_5, window_bounds = array<i64: 1, 32, 32>}, {pipeline_mode = #tpu.pipeline_mode<synchronous>, transform_indices = @transform_6, window_bounds = array<i64: 1, 32>}, {transform_indices = @transform_7, window_bounds = array<i64: 1, 8, 32>}]} {
    %c0 = arith.constant 0 : index
    %0 = memref.load %arg2[%c0] : memref<3xf32, #tpu.memory_space<smem>>
    %c1 = arith.constant 1 : index
    %1 = memref.load %arg2[%c1] : memref<3xf32, #tpu.memory_space<smem>>
    %c2 = arith.constant 2 : index
    %2 = memref.load %arg2[%c2] : memref<3xf32, #tpu.memory_space<smem>>
    %cst = arith.constant 1.250000e-01 : f32
    %3 = arith.mulf %2, %cst : f32
    %c0_0 = arith.constant 0 : index
    %c0_1 = arith.constant 0 : index
    %c0_2 = arith.constant 0 : index
    %4 = vector.load %arg3[%c0_0, %c0_1, %c0_2] : memref<1x8x32xbf16, #tpu.memory_space<vmem>>, vector<1x8x32xbf16>
    %5 = vector.shape_cast %4 : vector<1x8x32xbf16> to vector<8x32xbf16>
    %c0_3 = arith.constant 0 : index
    %c0_4 = arith.constant 0 : index
    %c0_5 = arith.constant 0 : index
    %6 = vector.load %arg4[%c0_3, %c0_4, %c0_5] : memref<1x32x32xbf16, #tpu.memory_space<vmem>>, vector<1x32x32xbf16>
    %7 = vector.shape_cast %6 : vector<1x32x32xbf16> to vector<32x32xbf16>
    %c0_6 = arith.constant 0 : index
    %c0_7 = arith.constant 0 : index
    %c0_8 = arith.constant 0 : index
    %8 = vector.load %arg5[%c0_6, %c0_7, %c0_8] : memref<1x32x32xbf16, #tpu.memory_space<vmem>>, vector<1x32x32xbf16>
    %9 = vector.shape_cast %8 : vector<1x32x32xbf16> to vector<32x32xbf16>
    %c0_9 = arith.constant 0 : index
    %c0_10 = arith.constant 0 : index
    %c0_11 = arith.constant 0 : index
    %10 = vector.load %arg6[%c0_9, %c0_10, %c0_11] : memref<1x32x32xbf16, #tpu.memory_space<vmem>>, vector<1x32x32xbf16>
    %11 = vector.shape_cast %10 : vector<1x32x32xbf16> to vector<32x32xbf16>
    %c0_12 = arith.constant 0 : index
    %c0_13 = arith.constant 0 : index
    %c0_14 = arith.constant 0 : index
    %12 = vector.load %arg7[%c0_12, %c0_13, %c0_14] : memref<1x32x32xbf16, #tpu.memory_space<vmem>>, vector<1x32x32xbf16>
    %13 = vector.shape_cast %12 : vector<1x32x32xbf16> to vector<32x32xbf16>
    %c0_15 = arith.constant 0 : index
    %c0_16 = arith.constant 0 : index
    %14 = vector.load %arg8[%c0_15, %c0_16] : memref<1x32xf32, #tpu.memory_space<vmem>>, vector<1x32xf32>
    %cst_17 = arith.constant dense<0.000000e+00> : vector<8x32xf32>
    %15 = tpu.matmul %5, %9, %cst_17 {dimension_numbers = #tpu.dot_dimension_numbers<[1], [0], [0], [1], [0, 0, 1, 1], [], []>} : vector<8x32xbf16>, vector<32x32xbf16>, vector<8x32xf32> -> vector<8x32xf32>
    %16 = arith.truncf %15 : vector<8x32xf32> to vector<8x32xbf16>
    %cst_18 = arith.constant dense<0.000000e+00> : vector<8x32xf32>
    %17 = tpu.matmul %5, %11, %cst_18 {dimension_numbers = #tpu.dot_dimension_numbers<[1], [0], [0], [1], [0, 0, 1, 1], [], []>} : vector<8x32xbf16>, vector<32x32xbf16>, vector<8x32xf32> -> vector<8x32xf32>
    %18 = arith.truncf %17 : vector<8x32xf32> to vector<8x32xbf16>
    %cst_19 = arith.constant dense<0.000000e+00> : vector<32xf32>
    %19 = vector.multi_reduction <add>, %17, %cst_19 [0] : vector<8x32xf32> to vector<32xf32>
    %20 = vector.shape_cast %19 : vector<32xf32> to vector<1x32xf32>
    %c0_20 = arith.constant 0 : index
    %c0_21 = arith.constant 0 : index
    %c0_22 = arith.constant 0 : index
    %21 = vector.load %arg3[%c0_20, %c0_21, %c0_22] : memref<1x8x32xbf16, #tpu.memory_space<vmem>>, vector<1x8x32xbf16>
    %22 = vector.shape_cast %21 : vector<1x8x32xbf16> to vector<8x32xbf16>
    %cst_23 = arith.constant dense<0.000000e+00> : vector<8x32xf32>
    %23 = tpu.matmul %22, %7, %cst_23 {dimension_numbers = #tpu.dot_dimension_numbers<[1], [0], [0], [1], [0, 0, 1, 1], [], []>} : vector<8x32xbf16>, vector<32x32xbf16>, vector<8x32xf32> -> vector<8x32xf32>
    %24 = vector.extract_strided_slice %23 {offsets = [0, 0], sizes = [8, 8], strides = [1, 1]} : vector<8x32xf32> to vector<8x8xf32>
    %25 = arith.truncf %24 : vector<8x8xf32> to vector<8x8xbf16>
    %26 = vector.extract_strided_slice %16 {offsets = [0, 0], sizes = [8, 8], strides = [1, 1]} : vector<8x32xbf16> to vector<8x8xbf16>
    %cst_24 = arith.constant dense<0.000000e+00> : vector<8x8xf32>
    %27 = tpu.matmul %25, %26, %cst_24 {dimension_numbers = #tpu.dot_dimension_numbers<[1], [1], [0], [0], [0, 0, 1, 0], [], []>} : vector<8x8xbf16>, vector<8x8xbf16>, vector<8x8xf32> -> vector<8x8xf32>
    %cst_25 = arith.constant dense<0xFF800000> : vector<8xf32>
    %28 = vector.multi_reduction <maximumf>, %27, %cst_25 [1] : vector<8x8xf32> to vector<8xf32>
    %29 = vector.shape_cast %28 : vector<8xf32> to vector<8x1xf32>
    %30 = vector.broadcast %29 : vector<8x1xf32> to vector<8x8xf32>
    %31 = arith.subf %27, %30 : vector<8x8xf32>
    %32 = math.exp %31 : vector<8x8xf32>
    %cst_26 = arith.constant dense<0.000000e+00> : vector<8xf32>
    %33 = vector.multi_reduction <add>, %32, %cst_26 [1] : vector<8x8xf32> to vector<8xf32>
    %34 = vector.shape_cast %33 : vector<8xf32> to vector<8x1xf32>
    %35 = arith.truncf %32 : vector<8x8xf32> to vector<8x8xbf16>
    %36 = vector.extract_strided_slice %18 {offsets = [0, 0], sizes = [8, 8], strides = [1, 1]} : vector<8x32xbf16> to vector<8x8xbf16>
    %cst_27 = arith.constant dense<0.000000e+00> : vector<8x8xf32>
    %37 = tpu.matmul %35, %36, %cst_27 {dimension_numbers = #tpu.dot_dimension_numbers<[1], [0], [0], [1], [0, 0, 1, 1], [], []>} : vector<8x8xbf16>, vector<8x8xbf16>, vector<8x8xf32> -> vector<8x8xf32>
    %38 = tpu.reciprocal %34 {approx = true} : vector<8x1xf32> -> vector<8x1xf32>
    %39 = vector.broadcast %1 : f32 to vector<8x1xf32>
    %40 = arith.mulf %39, %38 : vector<8x1xf32>
    %41 = vector.broadcast %40 : vector<8x1xf32> to vector<8x8xf32>
    %42 = arith.mulf %37, %41 : vector<8x8xf32>
    %c0_28 = arith.constant 0 : index
    %c0_29 = arith.constant 0 : index
    %43 = vector.load %arg10[%c0_28, %c0_29] : memref<8x32xf32, #tpu.memory_space<vmem>>, vector<8x8xf32>
    tpu.vector_store %arg10[%c0_28, %c0_29], %42 {strides = array<i32>} : memref<8x32xf32, #tpu.memory_space<vmem>>, vector<8x8xf32>,
    %44 = vector.extract_strided_slice %23 {offsets = [0, 8], sizes = [8, 8], strides = [1, 1]} : vector<8x32xf32> to vector<8x8xf32>
    %45 = arith.truncf %44 : vector<8x8xf32> to vector<8x8xbf16>
    %46 = vector.extract_strided_slice %16 {offsets = [0, 8], sizes = [8, 8], strides = [1, 1]} : vector<8x32xbf16> to vector<8x8xbf16>
    %cst_30 = arith.constant dense<0.000000e+00> : vector<8x8xf32>
    %47 = tpu.matmul %45, %46, %cst_30 {dimension_numbers = #tpu.dot_dimension_numbers<[1], [1], [0], [0], [0, 0, 1, 0], [], []>} : vector<8x8xbf16>, vector<8x8xbf16>, vector<8x8xf32> -> vector<8x8xf32>
    %cst_31 = arith.constant dense<0xFF800000> : vector<8xf32>
    %48 = vector.multi_reduction <maximumf>, %47, %cst_31 [1] : vector<8x8xf32> to vector<8xf32>
    %49 = vector.shape_cast %48 : vector<8xf32> to vector<8x1xf32>
    %50 = vector.broadcast %49 : vector<8x1xf32> to vector<8x8xf32>
    %51 = arith.subf %47, %50 : vector<8x8xf32>
    %52 = math.exp %51 : vector<8x8xf32>
    %cst_32 = arith.constant dense<0.000000e+00> : vector<8xf32>
    %53 = vector.multi_reduction <add>, %52, %cst_32 [1] : vector<8x8xf32> to vector<8xf32>
    %54 = vector.shape_cast %53 : vector<8xf32> to vector<8x1xf32>
    %55 = arith.truncf %52 : vector<8x8xf32> to vector<8x8xbf16>
    %56 = vector.extract_strided_slice %18 {offsets = [0, 8], sizes = [8, 8], strides = [1, 1]} : vector<8x32xbf16> to vector<8x8xbf16>
    %cst_33 = arith.constant dense<0.000000e+00> : vector<8x8xf32>
    %57 = tpu.matmul %55, %56, %cst_33 {dimension_numbers = #tpu.dot_dimension_numbers<[1], [0], [0], [1], [0, 0, 1, 1], [], []>} : vector<8x8xbf16>, vector<8x8xbf16>, vector<8x8xf32> -> vector<8x8xf32>
    %58 = tpu.reciprocal %54 {approx = true} : vector<8x1xf32> -> vector<8x1xf32>
    %59 = vector.broadcast %1 : f32 to vector<8x1xf32>
    %60 = arith.mulf %59, %58 : vector<8x1xf32>
    %61 = vector.broadcast %60 : vector<8x1xf32> to vector<8x8xf32>
    %62 = arith.mulf %57, %61 : vector<8x8xf32>
    %c0_34 = arith.constant 0 : index
    %c8 = arith.constant 8 : index
    %63 = vector.load %arg10[%c0_34, %c8] : memref<8x32xf32, #tpu.memory_space<vmem>>, vector<8x8xf32>
    tpu.vector_store %arg10[%c0_34, %c8], %62 {strides = array<i32>} : memref<8x32xf32, #tpu.memory_space<vmem>>, vector<8x8xf32>,
    %64 = vector.extract_strided_slice %23 {offsets = [0, 16], sizes = [8, 8], strides = [1, 1]} : vector<8x32xf32> to vector<8x8xf32>
    %65 = arith.truncf %64 : vector<8x8xf32> to vector<8x8xbf16>
    %66 = vector.extract_strided_slice %16 {offsets = [0, 16], sizes = [8, 8], strides = [1, 1]} : vector<8x32xbf16> to vector<8x8xbf16>
    %cst_35 = arith.constant dense<0.000000e+00> : vector<8x8xf32>
    %67 = tpu.matmul %65, %66, %cst_35 {dimension_numbers = #tpu.dot_dimension_numbers<[1], [1], [0], [0], [0, 0, 1, 0], [], []>} : vector<8x8xbf16>, vector<8x8xbf16>, vector<8x8xf32> -> vector<8x8xf32>
    %cst_36 = arith.constant dense<0xFF800000> : vector<8xf32>
    %68 = vector.multi_reduction <maximumf>, %67, %cst_36 [1] : vector<8x8xf32> to vector<8xf32>
    %69 = vector.shape_cast %68 : vector<8xf32> to vector<8x1xf32>
    %70 = vector.broadcast %69 : vector<8x1xf32> to vector<8x8xf32>
    %71 = arith.subf %67, %70 : vector<8x8xf32>
    %72 = math.exp %71 : vector<8x8xf32>
    %cst_37 = arith.constant dense<0.000000e+00> : vector<8xf32>
    %73 = vector.multi_reduction <add>, %72, %cst_37 [1] : vector<8x8xf32> to vector<8xf32>
    %74 = vector.shape_cast %73 : vector<8xf32> to vector<8x1xf32>
    %75 = arith.truncf %72 : vector<8x8xf32> to vector<8x8xbf16>
    %76 = vector.extract_strided_slice %18 {offsets = [0, 16], sizes = [8, 8], strides = [1, 1]} : vector<8x32xbf16> to vector<8x8xbf16>
    %cst_38 = arith.constant dense<0.000000e+00> : vector<8x8xf32>
    %77 = tpu.matmul %75, %76, %cst_38 {dimension_numbers = #tpu.dot_dimension_numbers<[1], [0], [0], [1], [0, 0, 1, 1], [], []>} : vector<8x8xbf16>, vector<8x8xbf16>, vector<8x8xf32> -> vector<8x8xf32>
    %78 = tpu.reciprocal %74 {approx = true} : vector<8x1xf32> -> vector<8x1xf32>
    %79 = vector.broadcast %1 : f32 to vector<8x1xf32>
    %80 = arith.mulf %79, %78 : vector<8x1xf32>
    %81 = vector.broadcast %80 : vector<8x1xf32> to vector<8x8xf32>
    %82 = arith.mulf %77, %81 : vector<8x8xf32>
    %c0_39 = arith.constant 0 : index
    %c16 = arith.constant 16 : index
    %83 = vector.load %arg10[%c0_39, %c16] : memref<8x32xf32, #tpu.memory_space<vmem>>, vector<8x8xf32>
    tpu.vector_store %arg10[%c0_39, %c16], %82 {strides = array<i32>} : memref<8x32xf32, #tpu.memory_space<vmem>>, vector<8x8xf32>,
    %84 = vector.extract_strided_slice %23 {offsets = [0, 24], sizes = [8, 8], strides = [1, 1]} : vector<8x32xf32> to vector<8x8xf32>
    %85 = arith.truncf %84 : vector<8x8xf32> to vector<8x8xbf16>
    %86 = vector.extract_strided_slice %16 {offsets = [0, 24], sizes = [8, 8], strides = [1, 1]} : vector<8x32xbf16> to vector<8x8xbf16>
    %cst_40 = arith.constant dense<0.000000e+00> : vector<8x8xf32>
    %87 = tpu.matmul %85, %86, %cst_40 {dimension_numbers = #tpu.dot_dimension_numbers<[1], [1], [0], [0], [0, 0, 1, 0], [], []>} : vector<8x8xbf16>, vector<8x8xbf16>, vector<8x8xf32> -> vector<8x8xf32>
    %cst_41 = arith.constant dense<0xFF800000> : vector<8xf32>
    %88 = vector.multi_reduction <maximumf>, %87, %cst_41 [1] : vector<8x8xf32> to vector<8xf32>
    %89 = vector.shape_cast %88 : vector<8xf32> to vector<8x1xf32>
    %90 = vector.broadcast %89 : vector<8x1xf32> to vector<8x8xf32>
    %91 = arith.subf %87, %90 : vector<8x8xf32>
    %92 = math.exp %91 : vector<8x8xf32>
    %cst_42 = arith.constant dense<0.000000e+00> : vector<8xf32>
    %93 = vector.multi_reduction <add>, %92, %cst_42 [1] : vector<8x8xf32> to vector<8xf32>
    %94 = vector.shape_cast %93 : vector<8xf32> to vector<8x1xf32>
    %95 = arith.truncf %92 : vector<8x8xf32> to vector<8x8xbf16>
    %96 = vector.extract_strided_slice %18 {offsets = [0, 24], sizes = [8, 8], strides = [1, 1]} : vector<8x32xbf16> to vector<8x8xbf16>
    %cst_43 = arith.constant dense<0.000000e+00> : vector<8x8xf32>
    %97 = tpu.matmul %95, %96, %cst_43 {dimension_numbers = #tpu.dot_dimension_numbers<[1], [0], [0], [1], [0, 0, 1, 1], [], []>} : vector<8x8xbf16>, vector<8x8xbf16>, vector<8x8xf32> -> vector<8x8xf32>
    %98 = tpu.reciprocal %94 {approx = true} : vector<8x1xf32> -> vector<8x1xf32>
    %99 = vector.broadcast %1 : f32 to vector<8x1xf32>
    %100 = arith.mulf %99, %98 : vector<8x1xf32>
    %101 = vector.broadcast %100 : vector<8x1xf32> to vector<8x8xf32>
    %102 = arith.mulf %97, %101 : vector<8x8xf32>
    %c0_44 = arith.constant 0 : index
    %c24 = arith.constant 24 : index
    %103 = vector.load %arg10[%c0_44, %c24] : memref<8x32xf32, #tpu.memory_space<vmem>>, vector<8x8xf32>
    tpu.vector_store %arg10[%c0_44, %c24], %102 {strides = array<i32>} : memref<8x32xf32, #tpu.memory_space<vmem>>, vector<8x8xf32>,
    %c0_45 = arith.constant 0 : index
    %c0_46 = arith.constant 0 : index
    %104 = vector.load %arg10[%c0_45, %c0_46] : memref<8x32xf32, #tpu.memory_space<vmem>>, vector<8x32xf32>
    %105 = vector.broadcast %0 : f32 to vector<8x32xf32>
    %106 = arith.mulf %105, %17 : vector<8x32xf32>
    %107 = arith.addf %104, %106 : vector<8x32xf32>
    %108 = vector.broadcast %3 : f32 to vector<1x32xf32>
    %109 = arith.mulf %108, %20 : vector<1x32xf32>
    %110 = vector.broadcast %109 : vector<1x32xf32> to vector<8x32xf32>
    %111 = arith.subf %107, %110 : vector<8x32xf32>
    %112 = arith.truncf %111 : vector<8x32xf32> to vector<8x32xbf16>
    %cst_47 = arith.constant dense<0.000000e+00> : vector<8x32xf32>
    %113 = tpu.matmul %112, %13, %cst_47 {dimension_numbers = #tpu.dot_dimension_numbers<[1], [0], [0], [1], [0, 0, 1, 1], [], []>} : vector<8x32xbf16>, vector<32x32xbf16>, vector<8x32xf32> -> vector<8x32xf32>
    %c0_i32 = arith.constant 0 : i32
    %114 = arith.cmpi eq, %arg1, %c0_i32 : i32
    %115 = arith.extui %114 : i1 to i32
    %c0_i32_48 = arith.constant 0 : i32
    %116 = arith.cmpi ne, %115, %c0_i32_48 : i32
    scf.if %116 {
      %120 = vector.broadcast %14 : vector<1x32xf32> to vector<8x32xf32>
      %121 = arith.addf %113, %120 : vector<8x32xf32>
      %c0_51 = arith.constant 0 : index
      %c0_52 = arith.constant 0 : index
      %c0_53 = arith.constant 0 : index
      %122 = vector.load %arg9[%c0_51, %c0_52, %c0_53] : memref<1x8x32xf32, #tpu.memory_space<vmem>>, vector<1x8x32xf32>
      %123 = vector.shape_cast %122 : vector<1x8x32xf32> to vector<8x32xf32>
      %124 = vector.shape_cast %121 : vector<8x32xf32> to vector<1x8x32xf32>
      tpu.vector_store %arg9[%c0_51, %c0_52, %c0_53], %124 {strides = array<i32>} : memref<1x8x32xf32, #tpu.memory_space<vmem>>, vector<1x8x32xf32>,
    } else {
    }
    %c0_i32_49 = arith.constant 0 : i32
    %117 = arith.cmpi ne, %arg1, %c0_i32_49 : i32
    %118 = arith.extui %117 : i1 to i32
    %c0_i32_50 = arith.constant 0 : i32
    %119 = arith.cmpi ne, %118, %c0_i32_50 : i32
    scf.if %119 {
      %c0_51 = arith.constant 0 : index
      %c0_52 = arith.constant 0 : index
      %c0_53 = arith.constant 0 : index
      %120 = vector.load %arg9[%c0_51, %c0_52, %c0_53] : memref<1x8x32xf32, #tpu.memory_space<vmem>>, vector<1x8x32xf32>
      %121 = vector.shape_cast %120 : vector<1x8x32xf32> to vector<8x32xf32>
      %122 = arith.addf %121, %113 : vector<8x32xf32>
      %c0_54 = arith.constant 0 : index
      %c0_55 = arith.constant 0 : index
      %c0_56 = arith.constant 0 : index
      %123 = vector.load %arg9[%c0_54, %c0_55, %c0_56] : memref<1x8x32xf32, #tpu.memory_space<vmem>>, vector<1x8x32xf32>
      %124 = vector.shape_cast %123 : vector<1x8x32xf32> to vector<8x32xf32>
      %125 = vector.shape_cast %122 : vector<8x32xf32> to vector<1x8x32xf32>
      tpu.vector_store %arg9[%c0_54, %c0_55, %c0_56], %125 {strides = array<i32>} : memref<1x8x32xf32, #tpu.memory_space<vmem>>, vector<1x8x32xf32>,
    } else {
    }
    return
  }
  func.func @transform_0(%arg0: i32, %arg1: i32) -> i32 {
    %c0_i32 = arith.constant 0 : i32
    %c0_i32_0 = arith.constant 0 : i32
    return %c0_i32 : i32
  }
  func.func @transform_1(%arg0: i32, %arg1: i32) -> (i32, i32, i32) {
    %c0_i32 = arith.constant 0 : i32
    %c0_i32_0 = arith.constant 0 : i32
    %c0_i32_1 = arith.constant 0 : i32
    return %arg0, %c0_i32, %c0_i32_0 : i32, i32, i32
  }
  func.func @transform_2(%arg0: i32, %arg1: i32) -> (i32, i32, i32) {
    %c0_i32 = arith.constant 0 : i32
    %c0_i32_0 = arith.constant 0 : i32
    %c0_i32_1 = arith.constant 0 : i32
    return %arg1, %c0_i32, %c0_i32_0 : i32, i32, i32
  }
  func.func @transform_3(%arg0: i32, %arg1: i32) -> (i32, i32, i32) {
    %c0_i32 = arith.constant 0 : i32
    %c0_i32_0 = arith.constant 0 : i32
    %c0_i32_1 = arith.constant 0 : i32
    return %arg1, %c0_i32, %c0_i32_0 : i32, i32, i32
  }
  func.func @transform_4(%arg0: i32, %arg1: i32) -> (i32, i32, i32) {
    %c0_i32 = arith.constant 0 : i32
    %c0_i32_0 = arith.constant 0 : i32
    %c0_i32_1 = arith.constant 0 : i32
    return %arg1, %c0_i32, %c0_i32_0 : i32, i32, i32
  }
  func.func @transform_5(%arg0: i32, %arg1: i32) -> (i32, i32, i32) {
    %c0_i32 = arith.constant 0 : i32
    %c0_i32_0 = arith.constant 0 : i32
    %c0_i32_1 = arith.constant 0 : i32
    return %arg1, %c0_i32, %c0_i32_0 : i32, i32, i32
  }
  func.func @transform_6(%arg0: i32, %arg1: i32) -> (i32, i32) {
    %c0_i32 = arith.constant 0 : i32
    %c0_i32_0 = arith.constant 0 : i32
    %c0_i32_1 = arith.constant 0 : i32
    return %c0_i32, %c0_i32_0 : i32, i32
  }
  func.func @transform_7(%arg0: i32, %arg1: i32) -> (i32, i32, i32) {
    %c0_i32 = arith.constant 0 : i32
    %c0_i32_0 = arith.constant 0 : i32
    %c0_i32_1 = arith.constant 0 : i32
    return %arg0, %c0_i32, %c0_i32_0 : i32, i32, i32
  }
}

</mosaic_0001>

<bundles_post_ra>
// kernel: tpu_custom_call.1
= control target key start
LH: loop header
LB: loop body
LE: loop exit
PB: predicated region body
PF: predicated region fallthrough
CT: control target
= control target key end

     0   :  { %s2266_s0 = inlined_call_operand.hbm [shape: f32[3], index: 0, kind: input, shape index: {}]   ;;  %s2267_s1 = inlined_call_operand.hbm [shape: bf16[2,8,32], index: 1, kind: input, shape index: {}]   ;;  %s2268_s2 = inlined_call_operand.hbm [shape: bf16[1,32,32], index: 2, kind: input, shape index: {}]   ;;  %s2269_s3 = inlined_call_operand.hbm [shape: bf16[1,32,32], index: 3, kind: input, shape index: {}]   ;;  %s2270_s4 = inlined_call_operand.hbm [shape: bf16[1,32,32], index: 4, kind: input, shape index: {}]   ;;  %s2271_s5 = inlined_call_operand.vmem [shape: bf16[1,32,32], index: 5, kind: input, shape index: {}]   ;;  %s2272_s6 = inlined_call_operand.vmem [shape: f32[1,32], index: 6, kind: input, shape index: {}]   ;;  %s2273_s7 = inlined_call_operand.hbm [shape: f32[2,8,32], index: 7, kind: output, shape index: {}]  }
   0x1   :  { %2280 = sst [smem:[#allocation19_spill]] %s2266_s0 }
   0x2   :  { %2281 = sst [smem:[#allocation20_spill]] %s2273_s7 }
   0x3   :  { %12 = vsyncpa [#allocation6], 0 }
   0x4   :  { %13 = vsyncpa [#allocation4], 0 }
   0x5   :  { %15 = vsyncpa [#allocation4 + $0x1], 0 }
   0x6   :  { %16 = vsyncpa [#allocation9], 0 }
   0x7   :  { %17 = vsyncpa [#allocation12], 0 }
   0x8   :  { %18 = vsyncpa [#allocation5], 0 }
   0x9   :  { %20 = vsyncpa [#allocation5 + $0x1], 0  ;;  %s1867_s24 = smov 0   ;;  %s1869_s25 = smov 0  }
   0xa   :  { %s1871_s26 = smov 0   ;;  %s1873_s27 = smov 0  }
   0xb   :  { %s1875_s28 = smov 0   ;;  %s1877_s29 = smov 0  }
   0xc LB: > { %s1811_s30 = smov [#allocation8]   ;;  %s2274_s9 = sadd.s32 4294967295, %s1809_s29   ;;  %s1809_s29 = sphi %s1877_s29, %s26_s29   ;;  %s1805_s28 = sphi %s1875_s28, %s2304_s28   ;;  %s1801_s27 = sphi %s1873_s27, %s2303_s27   ;;  %s1797_s26 = sphi %s1871_s26, %s2302_s26   ;;  %s1793_s25 = sphi %s1869_s25, %s2301_s25   ;;  %s1789_s24 = sphi %s1867_s24, %s2300_s24  }
   0xd   : > { %s265_s8 = sshll.u32 %s1811_s30, 4  ;;  %p1300_p0 = scmp.ge.s32.totalorder %s1809_s29, 1  ;;  %s1906_s8 = int_to_ptr.vmem [resolvable:$true] %s265_s8 }
   0xe   : > { %p1901_p1 = scmp.eq.s32.totalorder %s2274_s9, 0  ;;  %p241_p2 = scmp.lt.s32.totalorder %s1809_s29, 3 }
   0xf   : > { %s1812_s13 = smov [#allocation10]   ;;  %s1588_s17 = scalar_lea.hbm %s2268_s2, 256 }
  0x10   : > { %s2282_s10 = scalar_select %p1901_p1, 1, 0 }
  0x11   : > { %p1908_p3 = pnand %p1300_p0, %p241_p2  ;;  %s281_s14 = sshll.u32 %s1812_s13, 4  ;;  %s1921_s14 = int_to_ptr.vmem [resolvable:$true] %s281_s14 }
  0x12   : > { %p1589_p7 = scmp.ne.s32.totalorder %s2268_s2, %s1588_s17  ;;  %p1595_p11 = scmp.lt.u32.totalorder %s1588_s17, %s2268_s2 }
  0x13   : > { %s2283_s11 = scalar_select %p1908_p3, 1, 0 }
  0x14   : > { %p1471_p5 = pneg %p1908_p3 }
  0x16   : > { %p1917_p6 = pnand %p1471_p5, %p1901_p1 }
  0x18   : > { %p1931_p8 = pneg %p1917_p6 }
  0x1a   : > { %p1591_p9 = pnand %p1931_p8, %p1589_p7 }
  0x1c   : > { %p1592_p10 = pneg %p1591_p9 }
  0x1e   : > { %p1597_p12 = pnand %p1595_p11, %p1592_p10 }
  0x20   : > { %1600 = shalt.err (!%p1597_p12)
}
  0x21   : > { %s1601_s23 = scalar_lea.vmem %s1906_s8, 256  ;;  %p1609_p5 = scmp.lt.s32.totalorder %s1906_s8, %s1906_s8 }
  0x22   : > { %p1602_p13 = scmp.ne.s32.totalorder %s1906_s8, %s1601_s23  ;;  %p1610_p4 = scmp.lt.s32.totalorder %s1601_s23, %s1601_s23 }
  0x24   : > { %p1604_p0 = pnand %p1602_p13, %p1931_p8  ;;  %p1611_p7 = por %p1610_p4, %p1609_p5 }
  0x26   : > { %p1605_p2 = pneg %p1604_p0 }
  0x28   : > { %p1612_p9 = pnand %p1611_p7, %p1605_p2 }
  0x2a   : > { %1615 = shalt.err (!%p1612_p9)
}
  0x2b   : > { %s1813_s30 = smov 64   ;;  %s1814_s13 = smov 4  }
  0x2c   : > { %1477 = dma.hbm_to_vmem [thread:$0]  (!%p1917_p6), %s2268_s2, 256, %s1906_s8, [#allocation9], %s1813_s30, %s1813_s30, %s1814_s13  }
  0x2d   : > { %s2286_s0 = sld [smem:[#allocation19_spill]] }
  0x33   : > { %s1616_s19 = scalar_lea.hbm %s2286_s0, 16 }
  0x34   : > { %p1617_p4 = scmp.ne.s32.totalorder %s2286_s0, %s1616_s19  ;;  %p1623_p12 = scmp.lt.u32.totalorder %s1616_s19, %s2286_s0 }
  0x36   : > { %p1619_p10 = pnand %p1617_p4, %p1931_p8 }
  0x38   : > { %p1620_p11 = pneg %p1619_p10 }
  0x3a   : > { %p1625_p13 = pnand %p1623_p12, %p1620_p11 }
  0x3c   : > { %1628 = shalt.err (!%p1625_p13)
}
  0x3d   : > { %s1815_s7 = smov [#allocation3]   ;;  %s1629_s18 = scalar_lea.hbm %s2269_s3, 256 }
  0x3e   : > { %1474 = dma.hbm_to_smem (!%p1917_p6), %s2286_s0, 16, %s1815_s7, [#allocation6]  }
  0x3f   : > { %p1630_p0 = scmp.ne.s32.totalorder %s2269_s3, %s1629_s18  ;;  %p1636_p7 = scmp.lt.u32.totalorder %s1629_s18, %s2269_s3 }
  0x41   : > { %p1632_p2 = pnand %p1630_p0, %p1931_p8 }
  0x43   : > { %p1633_p5 = pneg %p1632_p2 }
  0x45   : > { %p1638_p9 = pnand %p1636_p7, %p1633_p5 }
  0x47   : > { %1641 = shalt.err (!%p1638_p9)
}
  0x48   : > { %s1642_s7 = scalar_lea.vmem %s1921_s14, 256  ;;  %p1650_p12 = scmp.lt.s32.totalorder %s1921_s14, %s1921_s14 }
  0x49   : > { %p1643_p4 = scmp.ne.s32.totalorder %s1921_s14, %s1642_s7  ;;  %p1651_p13 = scmp.lt.s32.totalorder %s1642_s7, %s1642_s7 }
  0x4b   : > { %p1645_p10 = pnand %p1643_p4, %p1931_p8  ;;  %p1652_p0 = por %p1651_p13, %p1650_p12 }
  0x4d   : > { %p1646_p11 = pneg %p1645_p10 }
  0x4f   : > { %p1653_p2 = pnand %p1652_p0, %p1646_p11 }
  0x51   : > { %1656 = shalt.err (!%p1653_p2)
}
  0x52   : > { %1480 = dma.hbm_to_vmem [thread:$0]  (!%p1917_p6), %s2269_s3, 256, %s1921_s14, [#allocation9], %s1813_s30, %s1813_s30, %s1814_s13  }
  0x53   : > { %s1816_s15 = smov [#allocation11]   ;;  %s1657_s21 = scalar_lea.hbm %s2270_s4, 256 }
  0x54   : > { %s297_s16 = sshll.u32 %s1816_s15, 4  ;;  %p1658_p5 = scmp.ne.s32.totalorder %s2270_s4, %s1657_s21  ;;  %s298_s16 = int_to_ptr.vmem [resolvable:$true] %s297_s16 }
  0x55   : > { %p1664_p4 = scmp.lt.u32.totalorder %s1657_s21, %s2270_s4 }
  0x56   : > { %p1660_p7 = pnand %p1658_p5, %p1931_p8 }
  0x58   : > { %p1661_p9 = pneg %p1660_p7 }
  0x5a   : > { %p1666_p10 = pnand %p1664_p4, %p1661_p9 }
  0x5c   : > { %1669 = shalt.err (!%p1666_p10)
}
  0x5d   : > { %s1670_s14 = scalar_lea.vmem %s298_s16, 256  ;;  %p1678_p0 = scmp.lt.s32.totalorder %s298_s16, %s298_s16 }
  0x5e   : > { %p1671_p11 = scmp.ne.s32.totalorder %s298_s16, %s1670_s14  ;;  %p1679_p2 = scmp.lt.s32.totalorder %s1670_s14, %s1670_s14 }
  0x60   : > { %p1673_p12 = pnand %p1671_p11, %p1931_p8  ;;  %p1680_p3 = por %p1679_p2, %p1678_p0 }
  0x62   : > { %p1674_p13 = pneg %p1673_p12 }
  0x64   : > { %p1681_p1 = pnand %p1680_p3, %p1674_p13 }
  0x66   : > { %1684 = shalt.err (!%p1681_p1)
}
  0x67   : > { %1483 = dma.hbm_to_vmem [thread:$0]  (!%p1917_p6), %s2270_s4, 256, %s298_s16, [#allocation12], %s1813_s30, %s1813_s30, %s1814_s13  }
  0x68   : > { %s1299_s12 = sadd.s32 4294967294, %s1809_s29   ;;  %s38_s20 = sadd.s32 1, %s1805_s28 }
  0x69   : > { %p40_p1 = scmp.ge.s32.totalorder %s38_s20, 2  ;;  %s66_s15 = sadd.s32 1, %s1797_s26 }
  0x6a   : > { %p73_p3 = scmp.ne.s32.totalorder %s1797_s26, %s1793_s25  ;;  %p74_p8 = scmp.eq.s32.totalorder %s1809_s29, 0 }
  0x6b   : > { %s2306_s20 = smov (%p40_p1, %s38_s20), 0  ;;  %p79_p7 = scmp.ne.s32.totalorder %s1793_s25, %s1789_s24 }
  0x6c   : > { %p2026_p5 = por %p74_p8, %p73_p3  ;;  %s63_s30 = ssub.s32 %s1805_s28, %s2306_s20 }
  0x6d   : > { %s2288_s13 = sadd.s32 4294967295, %s1809_s29   ;;  %p64_p9 = scmp.eq.s32.totalorder %s63_s30, 0 }
  0x6e   : > { %p228_p6 = scmp.eq.s32.totalorder %s2288_s13, 1  ;;  %p2289_p4 = scmp.ne.s32.totalorder %s2282_s10, 0 }
  0x6f   : > { %p234_p12 = scmp.eq.s32.totalorder %s1299_s12, 1  ;;  %p1496_p0 = scmp.lt.s32.totalorder %s1809_s29, 2 }
  0x70   : > { %p2038_p10 = por %p2289_p4, %p79_p7  ;;  %p2042_p11 = por %p228_p6, %p73_p3 }
  0x71   : > { %s2047_s21 = scalar_select %p64_p9, %s1797_s26, %s66_s15  }
  0x72   : > { %s2291_s18 = scalar_select %p2042_p11, 1, 0 }
  0x73   : > { %p2049_p13 = por %p234_p12, %p79_p7  ;;  %s322_s9 = sand.u32 1, %s1797_s26  }
  0x74   : > { %s1308_s19 = sshll.u32 %s1805_s28, 6  ;;  %s1307_s7 = sshll.u32 %s322_s9, 2 }
  0x75   : > { %s2292_s22 = scalar_select %p2049_p13, 1, 0 }
  0x76   : > { %s2059_s8 = scalar_lea.hbm %s2267_s1, %s1308_s19  ;;  %s326_s12 = scalar_lea.vmem [#allocation7], %s1307_s7 }
  0x77   : > { %s333_s15 = sshll.u32 %s326_s12, 4  ;;  %p2063_p2 = pnand %p1496_p0, %p2026_p5  ;;  %s2067_s15 = int_to_ptr.vmem [resolvable:$true] %s333_s15 }
  0x78   : > { %s323_s13 = scalar_lea.sflag [#allocation4], %s322_s9  ;;  %s1685_s0 = scalar_lea.hbm %s2059_s8, 64 }
  0x79   : > { %p1686_p1 = scmp.ne.s32.totalorder %s2059_s8, %s1685_s0  ;;  %p1687_p3 = pneg %p2063_p2 }
  0x7a   : > { %s1690_s17 = scalar_lea.hbm %s2267_s1, 128  ;;  %p1691_p5 = scmp.lt.u32.totalorder %s2059_s8, %s2267_s1 }
  0x7b   : > { %p1688_p8 = pnand %p1687_p3, %p1686_p1  ;;  %p1692_p6 = scmp.lt.u32.totalorder %s1690_s17, %s1685_s0 }
  0x7c   : > { %p1694_p4 = scmp.lt.u32.totalorder %s1685_s0, %s2059_s8 }
  0x7d   : > { %p1689_p7 = pneg %p1688_p8  ;;  %p1693_p9 = por %p1692_p6, %p1691_p5 }
  0x7f   : > { %p1695_p12 = por %p1694_p4, %p1693_p9 }
  0x81   : > { %p1696_p0 = pnand %p1695_p12, %p1689_p7 }
  0x83   : > { %1699 = shalt.err (!%p1696_p0)
}
  0x84   : > { %s1700_s9 = scalar_lea.vmem %s2067_s15, 64  ;;  %s1817_s12 = smov [#allocation7]  }
  0x85   : > { %p1701_p1 = scmp.ne.s32.totalorder %s2067_s15, %s1700_s9  ;;  %s1705_s19 = sshll.u32 %s1817_s12, 4  ;;  %s1706_s19 = int_to_ptr.vmem [resolvable:$false] %s1705_s19 }
  0x86   : > { %s1707_s7 = scalar_lea.vmem %s1706_s19, 128  ;;  %p1708_p11 = scmp.lt.s32.totalorder %s2067_s15, %s1706_s19 }
  0x87   : > { %p1703_p8 = pnand %p1701_p1, %p1687_p3  ;;  %p1709_p5 = scmp.lt.s32.totalorder %s1707_s7, %s1700_s9 }
  0x89   : > { %p1704_p13 = pneg %p1703_p8  ;;  %p1710_p6 = por %p1709_p5, %p1708_p11 }
  0x8b   : > { %p1711_p9 = pnand %p1710_p6, %p1704_p13 }
  0x8d   : > { %1714 = shalt.err (!%p1711_p9)
}
  0x8e   : > { %1487 = dma.hbm_to_vmem [thread:$0]  (!%p2063_p2), %s2059_s8, 64, %s2067_s15, %s323_s13  }
  0x8f   : > { %p2294_p7 = scmp.ne.s32.totalorder %s2283_s11, 0 }
  0x90   : > { %p2295_p3 = scmp.ne.s32.totalorder (!%p2294_p7), %s2282_s10, 0 }
  0x91   : > { %342 = sbr.rel (%p2294_p7) target bundleno = 1468 (0x5bc), region = 48 }
  0x98   : > { %1768 = dma.done.wait (%p2295_p3), [#allocation6], 16  }
  0x99   : > { %1770 = vsyncadd (%p2295_p3), [#allocation6], 4294967280  ;;  %s2101_s0 = sand.u32 1, %s1793_s25  }
  0x9a   : > { %s1311_s17 = sshll.u32 %s2101_s0, 2  ;;  %s349_s30 = scalar_lea.sflag [#allocation4], %s2101_s0 }
  0x9b   : > { %s352_s14 = scalar_lea.vmem [#allocation7], %s1311_s17 }
  0x9c   : > { %1772 = dma.done.wait (%p2038_p10), %s349_s30, 64  }
  0x9d   : > { %1774 = vsyncadd (%p2038_p10), %s349_s30, 4294967232 }
  0x9e   : > { %1776 = dma.done.wait (%p2295_p3), [#allocation9], 512  }
  0x9f   : > { %1778 = vsyncadd (%p2295_p3), [#allocation9], 4294966784 }
  0xa0   : > { %1780 = dma.done.wait (%p2295_p3), [#allocation12], 256  }
  0xa1   : > { %1782 = vsyncadd (%p2295_p3), [#allocation12], 4294967040 }
  0xa2   : > { %369 = sfence }
  0xa3   : > { %v1564_v0 = vld [vmem:[#allocation10] sm:$0xff]   ;;  %v1818_v1 = vmov 0.0   ;;  %v1565_v2 = vld [vmem:[#allocation10 + $0x8] sm:$0xff]   ;;  %vm1819_vm0 = vmmov 0   ;;  %v1568_v4 = vld [vmem:[#allocation11] sm:$0xff]   ;;  %vm441_vm1 = vcmask 261120  }
  0xa4   : > { %1371 = vmatprep.subr.bf16.mxu0 %v1818_v1  ;;  %1379 = vmatprep.subr.bf16.mxu1 %v1818_v1  ;;  %v411_v3 = vld [vmem:[%s352_s14] sm:$0xf]  ;;  %v1566_v5 = vld [vmem:[#allocation8] sm:$0xff]   ;;  %v1569_v6 = vld [vmem:[#allocation11 + $0x8] sm:$0xff]   ;;  %vm599_vm2 = vcmask 64512   ;;  %s1820_s10 = smov 112  }
  0xa5   : > { %1372 = vmatpush3.bf16.msra.mxu0 %v1564_v0  ;;  %1375 = vmatprep.mubr.msk.bf16.mxu0 %vm1819_vm0, %v1818_v1  ;;  %v1567_v7 = vld [vmem:[#allocation8 + $0x8] sm:$0xff]   ;;  %s1821_s11 = smov 120   ;;  %s1822_s16 = smov 104   ;;  %vm659_vm3 = vcmask 1043456   ;;  %vm826_vm4 = vcmask 130112   ;;  %vm943_vm5 = vcmask 195712  }
  0xa6   : > { %1373 = vmatprep.subr.bf16.mxu0 %v1818_v1  ;;  %1383 = vmatprep.mubr.msk.bf16.mxu1 %vm1819_vm0, %v1818_v1  ;;  %s1316_s8 = sld [smem:[#allocation3 + $0x1]]  ;;  %s1823_s15 = smov 8   ;;  %vm1060_vm6 = vcmask 261312  }
  0xa7   : > { %1380 = vmatpush3.bf16.msra.mxu1 %v1568_v4  ;;  %s1824_s19 = smov 16   ;;  %s1825_s7 = smov 24  }
  0xa8   : > { %1381 = vmatprep.subr.bf16.mxu1 %v1818_v1  ;;  %s1317_s17 = sld [smem:[#allocation3 + $0x2]]  ;;  %s407_s30 = sld [smem:[#allocation3]] }
  0xa9   : > { %1374 = vmatpush3.bf16.msra.mxu0 %v1565_v2  ;;  %s2296_s12 = sld [smem:[#allocation20_spill]]  ;;  %p2297_p11 = scmp.ne.s32.totalorder %s2291_s18, 0 }
  0xaa   : > { %1387 = vmatprep.subr.bf16.mxu0 %v1818_v1 }
  0xab   : > { %1382 = vmatpush3.bf16.msra.mxu1 %v1569_v6 }
  0xac   : > { %1376 = vmatmul.mubr.msk.bf16.vlgmr.msra.gmra.mrb[0].mxu0 %vm441_vm1, %v411_v3  ;;  %1395 = vmatprep.subr.bf16.mxu1 %v1818_v1 }
  0xad   : > { %1388 = vmatpush3.bf16.msra.mxu0 %v1566_v5  ;;  %1391 = vmatprep.mubr.msk.bf16.mxu0 %vm1819_vm0, %v1818_v1 }
  0xae   : > { %1389 = vmatprep.subr.bf16.mxu0 %v1818_v1  ;;  %1384 = vmatmul.mubr.msk.bf16.vlgmr.msra.gmra.mrb[0].mxu1 %vm441_vm1, %v411_v3  ;;  %s410_s14 = smul.f32 0.125, %s1317_s17  ;;  %s1826_s17 = smov [#allocation13]  }
  0xaf   : > { %1397 = vmatprep.mubr.msk.bf16.mxu1 %vm1819_vm0, %v1818_v1 }
  0xb1   : > { %1390 = vmatpush3.bf16.msra.mxu0 %v1567_v7 }
  0xb2   : > { %1401 = vmatprep.subr.bf16.mxu0 %v1818_v1 }
  0xb4   : > { %1392 = vmatmul.mubr.msk.bf16.vlgmr.msra.gmra.mrb[4].mxu0 %vm441_vm1, %v411_v3 }
  0xb5   : > { %1403 = vmatprep.mubr.msk.bf16.mxu0 %vm1819_vm0, %v1818_v1 }
 0x17f   : > { %v479_v8 = vpop.f32.mrb[0].mxu0 }
 0x180   : > { %v485_v9 = vpack.c.bf16 %v479_v8, %v479_v8  ;;  %v1377_v10 = vpop.f32.mrb[1].mxu0 }
 0x181   : > { %v482_v11 = vpop.f32.mrb[2].mxu0  ;;  %v2147_v19 = vpop.f32.mrb[0].mxu1 }
 0x182   : > { %830 = vrot.lane.b32.xlu1 %v485_v9, %s1820_s10  ;;  %712 = vrot.lane.b32.xlu0 %v485_v9, %s1821_s11  ;;  %v1378_v12 = vpop.f32.mrb[3].mxu0  ;;  %v604_v13 = vsel %vm599_vm2, %v485_v9, 0  ;;  %v1385_v20 = vpop.f32.mrb[1].mxu1  ;;  %v538_v23 = vpack.c.bf16 %v2147_v19, %v2147_v19 }
 0x183   : > { %1396 = vmatpush3.bf16.xpose.msra.mxu1 %v604_v13  ;;  %v535_v21 = vpop.f32.mrb[2].mxu1 }
 0x184   : > { %1407 = vmatprep.subr.bf16.mxu1 %v1818_v1  ;;  %v1386_v22 = vpop.f32.mrb[3].mxu1  ;;  %v661_v24 = vsel %vm659_vm3, %v538_v23, 0 }
 0x185   : > { %1402 = vmatpush3.bf16.msra.mxu0 %v661_v24 }
 0x186   : > { %1413 = vmatprep.subr.bf16.mxu0 %v1818_v1 }
 0x187   : > { %v592_v14 = vpop.f32.mrb[4].mxu0 }
 0x188   : > { %v598_v15 = vpack.c.bf16 %v592_v14, %v592_v14  ;;  %v1393_v16 = vpop.f32.mrb[5].mxu0 }
 0x189   : > { %v595_v17 = vpop.f32.mrb[6].mxu0 }
 0x18a   : > { %828 = vrot.lane.b32.xlu1 %v598_v15, %s1820_s10  ;;  %709 = vrot.lane.b32.xlu0 %v598_v15, %s1821_s11  ;;  %v1394_v18 = vpop.f32.mrb[7].mxu0 }
 0x18b   : > { %1398 = vmatmul.mubr.msk.bf16.vlgmr.msra.gmra.mrb[4].mxu1 %vm599_vm2, %v598_v15 }
 0x18c   : > { %1409 = vmatprep.mubr.msk.bf16.mxu1 %vm1819_vm0, %v1818_v1 }
 0x18e   : > { %945 = vrot.lane.b32.xlu1 %v598_v15, %s1822_s16  ;;  %947 = vrot.lane.b32.xlu0 %v485_v9, %s1822_s16 }
 0x1f4   : > { %v713_v25 = vpop.permute.xlu0 %712  ;;  %v831_v27 = vpop.permute.xlu1 %830 }
 0x1f5   : > { %v718_v26 = vsel %vm599_vm2, %v713_v25, 0  ;;  %v836_v29 = vsel %vm599_vm2, %v831_v27, 0 }
 0x1f6   : > { %1408 = vmatpush3.bf16.xpose.msra.mxu1 %v718_v26 }
 0x1f7   : > { %1419 = vmatprep.subr.bf16.mxu1 %v1818_v1 }
 0x1fc   : > { %v710_v28 = vpop.permute.xlu0 %709  ;;  %v829_v31 = vpop.permute.xlu1 %828 }
 0x1fd   : > { %1410 = vmatmul.mubr.msk.bf16.vlgmr.msra.gmra.mrb[8].mxu1 %vm599_vm2, %v710_v28 }
 0x1fe   : > { %1420 = vmatpush3.bf16.xpose.msra.mxu1 %v836_v29  ;;  %1421 = vmatprep.mubr.msk.bf16.mxu1 %vm1819_vm0, %v1818_v1  ;;  %v704_v29 = vstv %s1316_s8  ;;  %s1340_s8 = sshll.u32 %s1801_s27, 7  ;;  %s1145_s27 = scalar_lea.sflag [#allocation5], %s2101_s0 }
 0x1ff   : > { %1431 = vmatprep.subr.bf16.mxu1 %v1818_v1 }
 0x200   : > { %v948_v30 = vpop.permute.xlu0 %947  ;;  %v946_v33 = vpop.permute.xlu1 %945 }
 0x201   : > { %v953_v32 = vsel %vm599_vm2, %v948_v30, 0 }
 0x205   : > { %1422 = vmatmul.mubr.msk.bf16.vlgmr.msra.gmra.mrb[12].mxu1 %vm599_vm2, %v829_v31 }
 0x206   : > { %1432 = vmatpush3.bf16.xpose.msra.mxu1 %v953_v32  ;;  %1433 = vmatprep.mubr.msk.bf16.mxu1 %vm1819_vm0, %v1818_v1 }
 0x207   : > { %1443 = vmatprep.subr.bf16.mxu1 %v1818_v1 }
 0x20d   : > { %1434 = vmatmul.mubr.msk.bf16.vlgmr.msra.gmra.mrb[16].mxu1 %vm599_vm2, %v946_v33 }
 0x20e   : > { %1447 = vmatprep.mubr.msk.bf16.mxu1 %vm1819_vm0, %v1818_v1 }
 0x25e   : > { %v640_v34 = vpop.f32.mrb[4].mxu1 }
 0x25f   : > { %v1399_v35 = vpop.f32.mrb[5].mxu1  ;;  %v646_v36 = vsel %vm599_vm2, %v640_v34, -inf }
 0x260   : > { %647 = vmax.xlane.f32.xlu0 %v646_v36  ;;  %v643_v37 = vpop.f32.mrb[6].mxu1 }
 0x261   : > { %v1400_v38 = vpop.f32.mrb[7].mxu1 }
 0x2d0   : > { %v754_v39 = vpop.f32.mrb[8].mxu1 }
 0x2d1   : > { %v1411_v40 = vpop.f32.mrb[9].mxu1  ;;  %v760_v41 = vsel %vm599_vm2, %v754_v39, -inf }
 0x2d2   : > { %761 = vmax.xlane.f32.xlu1 %v760_v41  ;;  %v757_v42 = vpop.f32.mrb[10].mxu1 }
 0x2d3   : > { %v1412_v43 = vpop.f32.mrb[11].mxu1  ;;  %v1570_v42 = vld [vmem:[%s2271_s5] sm:$0xff]  }
 0x2d4   : > { %1444 = vmatpush3.bf16.msra.mxu1 %v1570_v42 }
 0x2d5   : > { %1445 = vmatprep.subr.bf16.mxu1 %v1818_v1 }
 0x2d8   : > { %v872_v44 = vpop.f32.mrb[12].mxu1 }
 0x2d9   : > { %v1423_v45 = vpop.f32.mrb[13].mxu1  ;;  %v878_v46 = vsel %vm599_vm2, %v872_v44, -inf }
 0x2da   : > { %879 = vmax.xlane.f32.xlu0 %v878_v46  ;;  %v875_v47 = vpop.f32.mrb[14].mxu1  ;;  %v1571_v45 = vld [vmem:[%s2271_s5 + $0x8] sm:$0xff]  }
 0x2db   : > { %v1424_v48 = vpop.f32.mrb[15].mxu1  ;;  %1446 = vmatpush3.bf16.msra.mxu1 %v1571_v45 }
 0x2e0   : > { %v989_v49 = vpop.f32.mrb[16].mxu1 }
 0x2e1   : > { %v1435_v50 = vpop.f32.mrb[17].mxu1  ;;  %v995_v51 = vsel %vm599_vm2, %v989_v49, -inf }
 0x2e2   : > { %996 = vmax.xlane.f32.xlu0 %v995_v51  ;;  %v992_v52 = vpop.f32.mrb[18].mxu1 }
 0x2e3   : > { %771 = vrot.lane.b32.xlu1 %v538_v23, %s1821_s11  ;;  %v1436_v53 = vpop.f32.mrb[19].mxu1 }
 0x2e7   : > { %1005 = vrot.lane.b32.xlu1 %v538_v23, %s1822_s16 }
 0x2ed   : > { %v648_v54 = vpop.xlane.xlu0 %647 }
 0x2ee   : > { %v649_v55 = vsub.f32 %v640_v34, %v648_v54 }
 0x2f0   : > { %v650_v56 = vmul.f32 1.442695, %v649_v55 }
 0x2f2   : > { %1572 = vpow2.f32 %v650_v56 }
 0x2f8   : > { %888 = vrot.lane.b32.xlu0 %v538_v23, %s1820_s10  ;;  %s1315_s10 = sshll.u32 %s2101_s0, 3 }
 0x2fc   : > { %v1573_v57 = vpop.eup %1572 }
 0x2fd   : > { %v655_v58 = vpack.c.bf16 %v1573_v57, %v1573_v57  ;;  %v652_v11 = vsel %vm599_vm2, %v1573_v57, 0.0  ;;  %v539_v57 = vsel %vm441_vm1, %v2147_v19, 0.0 }
 0x2ff   : > { %1404 = vmatmul.mubr.msk.bf16.vlgmr.msra.gmra.mrb[8].mxu0 %vm599_vm2, %v655_v58 }
 0x300   : > { %1415 = vmatprep.mubr.msk.bf16.mxu0 %vm1819_vm0, %v1818_v1 }
 0x35f   : > { %v762_v59 = vpop.xlane.xlu1 %761 }
 0x360   : > { %v763_v60 = vsub.f32 %v754_v39, %v762_v59 }
 0x362   : > { %v764_v61 = vmul.f32 1.442695, %v763_v60 }
 0x363   : > { %v772_v62 = vpop.permute.xlu1 %771 }
 0x364   : > { %1574 = vpow2.f32 %v764_v61  ;;  %v777_v63 = vsel %vm659_vm3, %v772_v62, 0 }
 0x365   : > { %1414 = vmatpush3.bf16.msra.mxu0 %v777_v63 }
 0x366   : > { %1425 = vmatprep.subr.bf16.mxu0 %v1818_v1 }
 0x367   : > { %v880_v0 = vpop.xlane.xlu0 %879  ;;  %v1006_v14 = vpop.permute.xlu1 %1005 }
 0x368   : > { %v881_v2 = vsub.f32 %v872_v44, %v880_v0  ;;  %v1011_v17 = vsel %vm659_vm3, %v1006_v14, 0 }
 0x36a   : > { %v882_v3 = vmul.f32 1.442695, %v881_v2  ;;  %v1063_v2 = vstv %s407_s30  ;;  %s1719_s30 = sshll.u32 %s1826_s17, 4  ;;  %s1720_s30 = int_to_ptr.vmem [resolvable:$false] %s1719_s30 }
 0x36c   : > { %1576 = vpow2.f32 %v882_v3 }
 0x36e   : > { %v1575_v4 = vpop.eup %1574 }
 0x36f   : > { %v997_v5 = vpop.xlane.xlu0 %996  ;;  %v766_v6 = vsel %vm599_vm2, %v1575_v4, 0.0  ;;  %v769_v7 = vpack.c.bf16 %v1575_v4, %v1575_v4  ;;  %v1066_v4 = vstv %s410_s14  ;;  %s1721_s14 = scalar_lea.vmem %s1720_s30, 256 }
 0x370   : > { %v998_v8 = vsub.f32 %v989_v49, %v997_v5  ;;  %767 = vadd.xlane.f32.xlu1 %v766_v6  ;;  %v1064_v5 = vmul.f32 %v1063_v2, %v2147_v19 }
 0x371   : > { %1416 = vmatmul.mubr.msk.bf16.vlgmr.msra.gmra.mrb[12].mxu0 %vm599_vm2, %v769_v7 }
 0x372   : > { %v999_v9 = vmul.f32 1.442695, %v998_v8  ;;  %1427 = vmatprep.mubr.msk.bf16.mxu0 %vm1819_vm0, %v1818_v1 }
 0x373   : > { %v889_v10 = vpop.permute.xlu0 %888 }
 0x374   : > { %1578 = vpow2.f32 %v999_v9  ;;  %v894_v12 = vsel %vm659_vm3, %v889_v10, 0  ;;  %653 = vadd.xlane.f32.xlu1 %v652_v11  ;;  %v1338_v11 = vld [vmem:[%s2272_s6] ss:$0 sm:$0xff] }
 0x375   : > { %1426 = vmatpush3.bf16.msra.mxu0 %v894_v12 }
 0x376   : > { %v1577_v13 = vpop.eup %1576  ;;  %1437 = vmatprep.subr.bf16.mxu0 %v1818_v1 }
 0x377   : > { %v884_v15 = vsel %vm599_vm2, %v1577_v13, 0.0  ;;  %v887_v16 = vpack.c.bf16 %v1577_v13, %v1577_v13 }
 0x378   : > { %885 = vadd.xlane.f32.xlu0 %v884_v15 }
 0x379   : > { %1428 = vmatmul.mubr.msk.bf16.vlgmr.msra.gmra.mrb[16].mxu0 %vm599_vm2, %v887_v16 }
 0x37a   : > { %1438 = vmatpush3.bf16.msra.mxu0 %v1011_v17  ;;  %1439 = vmatprep.mubr.msk.bf16.mxu0 %vm1819_vm0, %v1818_v1  ;;  %v540_v1 = vrot.slane %v539_v57, 4 }
 0x37c   : > { %v541_v59 = vadd.f32 %v540_v1, %v539_v57 }
 0x37e   : > { %v1579_v18 = vpop.eup %1578  ;;  %v542_v61 = vrot.slane %v541_v59, 2 }
 0x37f   : > { %v1001_v20 = vsel %vm599_vm2, %v1579_v18, 0.0  ;;  %v1004_v21 = vpack.c.bf16 %v1579_v18, %v1579_v18 }
 0x380   : > { %1002 = vadd.xlane.f32.xlu0 %v1001_v20  ;;  %v543_v62 = vadd.f32 %v542_v61, %v541_v59 }
 0x381   : > { %1440 = vmatmul.mubr.msk.bf16.vlgmr.msra.gmra.mrb[20].mxu0 %vm599_vm2, %v1004_v21 }
 0x382   : > { %v544_v0 = vrot.slane %v543_v62, 1 }
 0x384   : > { %v545_v3 = vadd.f32 %v544_v0, %v543_v62 }
 0x386   : > { %v1067_v7 = vmul.f32 %v1066_v4, %v545_v3 }
 0x3d2   : > { %v697_v22 = vpop.f32.mrb[8].mxu0 }
 0x3d3   : > { %v1405_v23 = vpop.f32.mrb[9].mxu0 }
 0x3d4   : > { %v700_v24 = vpop.f32.mrb[10].mxu0 }
 0x3d5   : > { %v1406_v25 = vpop.f32.mrb[11].mxu0 }
 0x3fd   : > { %v768_v26 = vpop.xlane.xlu1 %767 }
 0x401   : > { %v654_v27 = vpop.xlane.xlu1 %653 }
 0x402   : > { %1580 = vrcp.f32 %v654_v27 }
 0x403   : > { %1582 = vrcp.f32 %v768_v26 }
 0x405   : > { %v886_v32 = vpop.xlane.xlu0 %885 }
 0x406   : > { %1584 = vrcp.f32 %v886_v32 }
 0x40c   : > { %v1581_v28 = vpop.eup %1580 }
 0x40d   : > { %v705_v30 = vmul.f32 %v1581_v28, %v704_v29  ;;  %v1583_v33 = vpop.eup %1582  ;;  %v1003_v34 = vpop.xlane.xlu0 %1002 }
 0x40e   : > { %v820_v35 = vmul.f32 %v1583_v33, %v704_v29  ;;  %1586 = vrcp.f32 %v1003_v34 }
 0x40f   : > { %v706_v31 = vmul.f32 %v705_v30, %v697_v22 }
 0x410   : > { %v1585_v41 = vpop.eup %1584 }
 0x411   : > { %707 = vst.msk [vmem:[#allocation2] sm:$0xff] %vm599_vm2, %v706_v31  ;;  %v937_v43 = vmul.f32 %v1585_v41, %v704_v29 }
 0x418   : > { %v1587_v50 = vpop.eup %1586 }
 0x419   : > { %v1054_v51 = vmul.f32 %v1587_v50, %v704_v29 }
 0x444   : > { %v813_v36 = vpop.f32.mrb[12].mxu0 }
 0x445   : > { %v821_v37 = vmul.f32 %v820_v35, %v813_v36  ;;  %v1417_v38 = vpop.f32.mrb[13].mxu0 }
 0x446   : > { %v816_v39 = vpop.f32.mrb[14].mxu0 }
 0x447   : > { %v1418_v40 = vpop.f32.mrb[15].mxu0  ;;  %823 = vrot.lane.b32.xlu0 %v821_v37, %s1823_s15  ;;  %s400_s15 = scalar_lea.vmem [#allocation13], %s1315_s10 }
 0x448   : > { %s1158_s13 = sshll.u32 %s400_s15, 4  ;;  %s2218_s13 = int_to_ptr.vmem [resolvable:$true] %s1158_s13 }
 0x449   : > { %p1722_p4 = scmp.lt.s32.totalorder %s2218_s13, %s1720_s30 }
 0x44c   : > { %v930_v44 = vpop.f32.mrb[16].mxu0 }
 0x44d   : > { %v938_v46 = vmul.f32 %v937_v43, %v930_v44  ;;  %v1429_v47 = vpop.f32.mrb[17].mxu0 }
 0x44e   : > { %v933_v48 = vpop.f32.mrb[18].mxu0 }
 0x44f   : > { %v1430_v49 = vpop.f32.mrb[19].mxu0  ;;  %940 = vrot.lane.b32.xlu1 %v938_v46, %s1824_s19  ;;  %s2216_s19 = scalar_lea.hbm %s2296_s12, %s1340_s8 }
 0x454   : > { %v1047_v52 = vpop.f32.mrb[20].mxu0 }
 0x455   : > { %v1055_v53 = vmul.f32 %v1054_v51, %v1047_v52  ;;  %v1441_v54 = vpop.f32.mrb[21].mxu0 }
 0x456   : > { %v1050_v55 = vpop.f32.mrb[22].mxu0 }
 0x457   : > { %v1442_v56 = vpop.f32.mrb[23].mxu0  ;;  %1057 = vrot.lane.b32.xlu1 %v1055_v53, %s1825_s7  ;;  %s1715_s7 = scalar_lea.vmem %s2218_s13, 128 }
 0x458   : > { %p1716_p10 = scmp.ne.s32.totalorder %s2218_s13, %s1715_s7  ;;  %p1723_p12 = scmp.lt.s32.totalorder %s1721_s14, %s1715_s7 }
 0x45a   : > { %p1717_p13 = pnand %p1716_p10, %p2297_p11  ;;  %p1724_p0 = por %p1723_p12, %p1722_p4 }
 0x45c   : > { %p1718_p2 = pneg %p1717_p13 }
 0x45e   : > { %p1725_p1 = pnand %p1724_p0, %p1718_p2 }
 0x4b9   : > { %v824_v58 = vpop.permute.xlu0 %823 }
 0x4ba   : > { %827 = vst.msk [vmem:[#allocation2] sm:$0xff] %vm826_vm4, %v824_v58 }
 0x4c1   : > { %v941_v60 = vpop.permute.xlu1 %940 }
 0x4c2   : > { %944 = vst.msk [vmem:[#allocation2] sm:$0xff] %vm943_vm5, %v941_v60 }
 0x4c9   : > { %v1058_v63 = vpop.permute.xlu1 %1057 }
 0x4ca   : > { %1061 = vst.msk [vmem:[#allocation2] sm:$0xff] %vm1060_vm6, %v1058_v63 }
 0x4d1   : > { %v1062_v6 = vld [vmem:[#allocation2] sm:$0xff] }
 0x4d2   : > { %v1065_v8 = vadd.f32 %v1064_v5, %v1062_v6 }
 0x4d4   : > { %v1068_v9 = vsub.f32 %v1065_v8, %v1067_v7 }
 0x4d6   : > { %v1069_v10 = vpack.c.bf16 %v1068_v9, %v1068_v9 }
 0x4d8   : > { %1448 = vmatmul.mubr.msk.bf16.vlgmr.msra.gmra.mrb[20].mxu1 %vm441_vm1, %v1069_v10 }
 0x5ab   : > { %v1119_v12 = vpop.f32.mrb[20].mxu1 }
 0x5ac   : > { %v1135_v13 = vadd.f32 %v1338_v11, %v1119_v12  ;;  %v1449_v19 = vpop.f32.mrb[21].mxu1 }
 0x5ad   : > { %v1122_v14 = vpop.f32.mrb[22].mxu1 }
 0x5ae   : > { %v1450_v15 = vpop.f32.mrb[23].mxu1  ;;  %1136 = vst.msk [vmem:[%s400_s15] sm:$0xff] %vm441_vm1, %v1135_v13 }
 0x5af   : > { %1728 = shalt.err (!%p1725_p1)
}
 0x5b0   : > { %s1729_s0 = scalar_lea.hbm %s2216_s19, 128  ;;  %s1733_s16 = scalar_lea.hbm %s2296_s12, 256 }
 0x5b1   : > { %p1730_p8 = scmp.ne.s32.totalorder %s2216_s19, %s1729_s0  ;;  %p1734_p9 = scmp.lt.u32.totalorder %s2216_s19, %s2296_s12 }
 0x5b2   : > { %p1735_p7 = scmp.lt.u32.totalorder %s1733_s16, %s1729_s0  ;;  %p1737_p10 = scmp.lt.u32.totalorder %s1729_s0, %s2216_s19 }
 0x5b3   : > { %p1731_p5 = pnand %p1730_p8, %p2297_p11 }
 0x5b4   : > { %p1736_p3 = por %p1735_p7, %p1734_p9 }
 0x5b5   : > { %p1732_p6 = pneg %p1731_p5 }
 0x5b6   : > { %p1738_p13 = por %p1737_p10, %p1736_p3 }
 0x5b8   : > { %p1739_p2 = pnand %p1738_p13, %p1732_p6 }
 0x5ba   : > { %1742 = shalt.err (!%p1739_p2)
}
 0x5bb   : > { %1469 = dma.vmem_to_hbm [thread:$0]  (%p2297_p11), %s2218_s13, 128, %s2216_s19, %s1145_s27  }
 0x5bc PF: > { %s1170_s23 = sand.u32 1, %s1789_s24   ;;  %p2298_p4 = scmp.ne.s32.totalorder %s2292_s22, 0 }
 0x5bd   : > { %p2299_p12 = scmp.ge.s32.totalorder %s1809_s29, 2  ;;  %s1171_s9 = scalar_lea.sflag [#allocation5], %s1170_s23 }
 0x5bf   : > { %p1489_p0 = pnand %p2299_p12, %p2298_p4 }
 0x5c1   : > { %1784 = dma.done.wait (!%p1489_p0), %s1171_s9, 128  }
 0x5c2   : > { %1786 = vsyncadd (!%p1489_p0), %s1171_s9, 4294967168  ;;  %s26_s29 = sadd.s32 1, %s1809_s29   ;;  %s2300_s24 = smov %s1793_s25 }
 0x5c3   : > { %p23_p1 = scmp.ge.s32.totalorder %s26_s29, 4   ;;  %s2301_s25 = smov %s1797_s26 }
 0x5c4   : > { %s2302_s26 = smov %s2047_s21  ;;  %s2303_s27 = smov %s1805_s28 }
 0x5c5   : > { %s2304_s28 = smov %s2306_s20  ;;  %25 = sbr.rel (!%p23_p1) target bundleno = 12 (0xc), region = 124 }
 0x5cc   :  { %1176 = vsyncpa [#allocation4], 1 }
 0x5cd   :  { %1178 = vsyncpa [#allocation4 + $0x1], 1 }
 0x5ce   :  { %1179 = vsyncpa [#allocation9], 1 }
 0x5cf   :  { %1180 = vsyncpa [#allocation12], 1 }
 0x5d0   :  { %1181 = vsyncpa [#allocation5], 1 }
 0x5d1   :  { %1183 = vsyncpa [#allocation5 + $0x1], 1 }
 0x5d2   :  { %1184 = vsyncpa [#allocation6], 1 }
 0x5d3   :  { %1186 = vsyncpa [#allocation6 + $0x1], 1 }

</bundles_post_ra>
